<compile_context>
chip_gen: v7x
topology: tpu7x:2x2x1
jax: 0.10.0
libtpu: 0.0.40
codegen_flags: <defaults>
</compile_context>

<pallas_src>
import math

import jax
import jax.numpy as jnp
import numpy as np
from jax import lax
from jax.experimental import pallas as pl
from jax.experimental.pallas import tpu as pltpu


# ----------------------------- Pallas kernel ------------------------------- #

def _make_repack_kernel(obt, icb, icp, s):
    """get_weight() reorder for `obt` blocks of 8 output channels per step.

    x_ref : (obt*8*icp, s) int8   rows ordered (oc_blk, oc8, ic_blk, ic8),
                                  cols = kh*kw (natural OIHW view)
    o_ref : (s, obt*icp*8) int8   cols ordered (oc_blk, ic_blk, oc8, ic8)
                                  == the FPGA stream chunk for these oc blocks
    """

    def repack_kernel(x_ref, o_ref):
        # Static unroll over the obt oc-blocks of this step (obt <= 16) so all
        # slice offsets are compile-time constants and only ~2 small int32
        # copies are ever live at once (vs. whole-block copies before).
        for a in range(obt):
            r0 = a * 8 * icp
            # HBM <-> VMEM stays 1 byte/element; widen to int32 only inside
            # VMEM (the robust Mosaic relayout path), per chunk.
            v = x_ref[r0:r0 + 8 * icp, :].astype(jnp.int32)      # (8*icp, s)
            if icb > 1:
                # (oc8, ic_blk, ic8, s) -> (ic_blk, oc8, ic8, s): leading-dims
                # -only shuffle; both reshapes keep the minor dim and an
                # 8-aligned sublane factor, so they are layout-preserving.
                v = v.reshape(8, icb, 8, s)
                v = jnp.transpose(v, (1, 0, 2, 3))
                v = v.reshape(icp * 8, s)
            # spatial (minor) -> major: one 2-D XLU transpose, then narrow and
            # store a lane-dense, 128-aligned column stripe of the output.
            c0 = a * icp * 8
            o_ref[:, c0:c0 + icp * 8] = jnp.transpose(v, (1, 0)).astype(jnp.int8)

    return repack_kernel


# ------------------------------- tiling ------------------------------------ #

def _pick_oc_blocks_per_step(ocb, icp, s):
    """#(8-output-channel blocks) per grid step -> (obt, needs_pad).

    * bounds the lane-padded VMEM footprint of the input block (~2 MiB int8,
      i.e. rows * 128 B) and the unroll factor (<= 16),
    * keeps >= 2 grid steps for layers > 256 KiB so the "parallel" grid axis
      can span both v7x TensorCores,
    * the per-step output stripe must be a multiple of 128 lanes unless it is
      the full row  =>  obt*icp % 16 == 0,
    * prefers a large exact divisor of ocb; otherwise signals the caller to
      pad ocb up to a multiple of obt (no more divisor-search perf cliff).
    """
    need = 16 // math.gcd(icp, 16)                 # 1 (icp%16==0) or 2 (icp%16==8)
    obt_max = max(1, (2 * 1024 * 1024) // (8 * icp * 128))
    obt_max = min(obt_max, 16, ocb)
    total_bytes = ocb * 8 * icp * s
    if total_bytes > 256 * 1024:
        obt_max = min(obt_max, max(1, ocb // 2))
    if obt_max >= ocb:
        return ocb, False
    obt_max = max(need, (obt_max // need) * need)
    if obt_max >= ocb:
        return ocb, False
    best = 0
    for cand in range(obt_max, 0, -need):
        if ocb % cand == 0:
            best = cand
            break
    if best and best * 3 >= obt_max:
        return best, False
    return obt_max, True                            # caller pads + slices


# -------------------------- gen_M_N (plain XLA) ----------------------------- #

def _gen_m_n(s1, s2, s3):
    """Exact frexp-style bit math for the reference doubling/log algorithm.

    Assumes 0 < M <= 1 and M normal (otherwise the reference while-loop never
    terminates, so that region is undefined behaviour there too).
    SCALE = trunc(m_norm * 2^32) (wraps to 0 for M == 1.0 like the numpy cast)
    N_REAL = (#doublings) - 1, bit-cast to uint32.
    """
    m = (s1 * s2 / s3).astype(jnp.float32)
    bits = lax.bitcast_convert_type(m, jnp.int32)
    exp_field = (bits >> 23) & 0xFF
    mant = bits & 0x7FFFFF
    # while not (0.5 <= m <= 1.0): m *= 2   ->  k doublings
    k = jnp.where(m >= 1.0, 0, 126 - exp_field).astype(jnp.int32)
    base = lax.bitcast_convert_type((mant | (1 << 23)).astype(jnp.int32),
                                    jnp.uint32)
    scale = jnp.where(m >= 1.0, base << 9, base << 8)
    n_real = lax.bitcast_convert_type(k - 1, jnp.uint32)
    return scale, n_real


# ------------------------------- wrapper ------------------------------------ #

def conv2d_q_forward(x, q_weight, bias,
                     quant_scale1, quant_zero_point1,
                     quant_scale2, quant_zero_point2,
                     quant_scale3, quant_zero_point3):
    del x, quant_zero_point1, quant_zero_point2, quant_zero_point3  # unused

    oc, ic, kh, kw = q_weight.shape
    ocp = -(-oc // 8) * 8
    icp = -(-ic // 8) * 8
    ocb, icb = ocp // 8, icp // 8
    s = kh * kw

    obt, needs_pad = _pick_oc_blocks_per_step(ocb, icp, s)
    ocb_pad = (-(-ocb // obt)) * obt if needs_pad else ocb
    ocp_pad = ocb_pad * 8

    # --- add_weight_channel: zero-pad channels (single XLA copy; skipped when
    #     already aligned and no tiling padding is required). ---
    qw8 = q_weight.astype(jnp.int8)
    if (ocp_pad, icp) != (oc, ic):
        w_pad = jnp.zeros((ocp_pad, icp, kh, kw), jnp.int8).at[:oc, :ic].set(qw8)
    else:
        w_pad = qw8
    w2 = w_pad.reshape(ocp_pad * icp, s)   # free view: rows=(oc,ic), cols=(kh,kw)

    # --- Pallas kernel: get_weight reorder, fused into ONE pass whose output
    #     IS the stream ((s, ocp*icp) int8, row-major flatten == FPGA order) ---
    grid_g = ocb_pad // obt
    col_w = obt * icp * 8

    stream2d = pl.pallas_call(
        _make_repack_kernel(obt, icb, icp, s),
        out_shape=jax.ShapeDtypeStruct((s, ocp_pad * icp), jnp.int8),
        grid=(grid_g,),
        in_specs=[pl.BlockSpec((obt * 8 * icp, s), lambda g: (g, 0))],
        out_specs=pl.BlockSpec((s, col_w), lambda g: (0, g)),
        compiler_params=pltpu.CompilerParams(
            dimension_semantics=("parallel",),          # v7x: shard across TCs
            vmem_limit_bytes=32 * 1024 * 1024),
        cost_estimate=pl.CostEstimate(flops=0, transcendentals=0,
                                      bytes_accessed=2 * ocp_pad * icp * s),
    )(w2)

    if ocp_pad != ocp:
        # Tiling padding lives in the trailing columns of every row: drop it.
        stream2d = stream2d[:, :ocp * icp]

    # int8 -> uint8 is a free bit reinterpretation; flatten is a free view.
    weight_stream = lax.bitcast_convert_type(stream2d, jnp.uint8).reshape(-1)

    # --- gen_M_N: O(C) elementwise bit math, done in plain jnp/XLA (review:
    #     a dedicated pallas_call launch costs more than the work itself). ---
    s1 = jnp.asarray(quant_scale1, jnp.float32)
    s2 = jnp.asarray(quant_scale2, jnp.float32).reshape(-1)
    s3 = jnp.asarray(quant_scale3, jnp.float32)
    SCALE, N_REAL = _gen_m_n(s1, s2, s3)

    bias_u32 = lax.bitcast_convert_type(
        jnp.asarray(bias).astype(jnp.int32), jnp.uint32)   # wraps like numpy

    # TODO(synk): the reference forward writes weight/bias/SCALE/N_REAL to a
    # binary file (path1) and optionally 'bias.coe'; host file I/O has no
    # Pallas equivalent, so the packed tensors are returned instead.
    return weight_stream, bias_u32, SCALE, N_REAL


# --------------------------------- main ------------------------------------ #

if __name__ == "__main__":
    key = jax.random.PRNGKey(0)
    kx, kwgt, kb, ks2 = jax.random.split(key, 4)

    x = jax.random.normal(kx, (2, 4, 16, 16), jnp.float32)            # NCHW (unused)
    q_weight = jax.random.randint(kwgt, (4, 4, 3, 3), -128, 128,
                                  jnp.int32).astype(jnp.int8)         # OIHW int8
    bias = jax.random.randint(kb, (4,), 0, 1024, jnp.int32)
    quant_scale1 = jnp.float32(0.05)                                  # input act scale
    quant_scale2 = jax.random.uniform(ks2, (4,), jnp.float32, 0.001, 0.01)
    quant_scale3 = jnp.float32(0.125)                                 # output act scale

    outs = conv2d_q_forward(x, q_weight, bias,
                            quant_scale1, 0, quant_scale2, 0, quant_scale3, 0)
    outs = jax.block_until_ready(outs)
    weight_stream, bias_u32, SCALE, N_REAL = outs

    # shape / dtype contract
    assert weight_stream.shape == (3 * 3 * 8 * 8,) and weight_stream.dtype == jnp.uint8
    assert bias_u32.shape == (4,) and bias_u32.dtype == jnp.uint32
    assert SCALE.shape == (4,) and SCALE.dtype == jnp.uint32
    assert N_REAL.shape == (4,) and N_REAL.dtype == jnp.uint32

    # --- bit-exact check of the weight stream vs. the reference ordering ---
    oc, ic, kh, kw = q_weight.shape
    wp = np.zeros((8, 8, kh, kw), np.int8)
    wp[:oc, :ic] = np.asarray(q_weight)
    ref_stream = (wp.reshape(1, 8, 1, 8, kh, kw)
                    .transpose(4, 5, 0, 2, 1, 3)
                    .reshape(-1).astype(np.uint8))
    assert np.array_equal(np.asarray(weight_stream), ref_stream)

    # --- bit-exact check of gen_M_N vs. the reference doubling/log algorithm ---
    m_ref = (np.float32(quant_scale1) * np.asarray(quant_scale2, np.float32)) \
        / np.float32(quant_scale3)
    scale_ref = np.zeros(4, np.uint32)
    nreal_ref = np.zeros(4, np.uint32)
    for i, mi in enumerate(m_ref):
        v = np.float32(mi)
        while not (v >= 0.5 and v <= 1.0):
            v = np.float32(v * 2)
        scale_ref[i] = np.uint32(int(float(v) * 2 ** 32) & 0xFFFFFFFF)
        nreal_ref[i] = np.uint32(
            (round(math.log(int(scale_ref[i]) / float(mi), 2)) - 32 - 1) & 0xFFFFFFFF)
    assert np.array_equal(np.asarray(SCALE), scale_ref)
    assert np.array_equal(np.asarray(N_REAL), nreal_ref)
    assert np.array_equal(np.asarray(bias_u32), np.asarray(bias).astype(np.uint32))

    print("KERNEL_OK")
</pallas_src>

<mosaic_0001>
module attributes {stable_mosaic.version = 11 : i64} {
  func.func @repack_kernel(%arg0: i32, %arg1: memref<64x9xi8, #tpu.memory_space<vmem>>, %arg2: memref<9x64xi8, #tpu.memory_space<vmem>>) attributes {dimension_semantics = [#tpu.dimension_semantics<parallel>], iteration_bounds = array<i64: 1>, scalar_prefetch = 0 : i64, scratch_operands = 0 : i64, tpu.core_type = #tpu.core_type<tc>, window_params = [{transform_indices = @transform_0, window_bounds = array<i64: 64, 9>}, {transform_indices = @transform_1, window_bounds = array<i64: 9, 64>}]} {
    %c0 = arith.constant 0 : index
    %c0_0 = arith.constant 0 : index
    %0 = vector.load %arg1[%c0, %c0_0] : memref<64x9xi8, #tpu.memory_space<vmem>>, vector<64x9xi8>
    %1 = arith.extsi %0 : vector<64x9xi8> to vector<64x9xi32>
    %2 = tpu.transpose %1, [1, 0] : vector<64x9xi32> -> vector<9x64xi32>
    %3 = arith.trunci %2 : vector<9x64xi32> to vector<9x64xi8>
    %c0_1 = arith.constant 0 : index
    %c0_2 = arith.constant 0 : index
    %4 = vector.load %arg2[%c0_1, %c0_2] : memref<9x64xi8, #tpu.memory_space<vmem>>, vector<9x64xi8>
    tpu.vector_store %arg2[%c0_1, %c0_2], %3 {strides = array<i32>} : memref<9x64xi8, #tpu.memory_space<vmem>>, vector<9x64xi8>,
    return
  }
  func.func @transform_0(%arg0: i32) -> (i32, i32) {
    %c0_i32 = arith.constant 0 : i32
    %c0_i32_0 = arith.constant 0 : i32
    return %arg0, %c0_i32 : i32, i32
  }
  func.func @transform_1(%arg0: i32) -> (i32, i32) {
    %c0_i32 = arith.constant 0 : i32
    %c0_i32_0 = arith.constant 0 : i32
    return %c0_i32, %arg0 : i32, i32
  }
}

</mosaic_0001>

<bundles_post_ra>
// kernel: tpu_custom_call.1
= control target key start
LH: loop header
LB: loop body
LE: loop exit
PB: predicated region body
PF: predicated region fallthrough
CT: control target
= control target key end

     0   :  { %s163_s0 = inlined_call_operand.vmem [shape: s8[64,9], index: 0, kind: input, shape index: {}]   ;;  %s164_s1 = inlined_call_operand.hbm [shape: s8[9,64], index: 1, kind: output, shape index: {}]  }
   0x1   :  { %v86_v0 = vld [vmem:[%s163_s0] sm:$0xff]  }
   0x2   :  { %6 = vsyncpa [#allocation3], 0  ;;  %v87_v1 = vunpack.c.0.s8 %v86_v0  ;;  %v88_v2 = vunpack.c.1.s8 %v86_v0  ;;  %v91_v3 = vunpack.c.2.s8 %v86_v0  ;;  %v92_v4 = vunpack.c.3.s8 %v86_v0  ;;  %v102_v5 = vld [vmem:[%s163_s0 + $0x8] sm:$0xff]   ;;  %s132_s10 = smov [#allocation2]   ;;  %v66_v15 = vld [vmem:[#allocation2 + $0x2] sm:$0x1] }
   0x3   :  { %v95_v6 = vunpack.c.0.s8 %v102_v5  ;;  %v96_v7 = vunpack.c.1.s8 %v102_v5  ;;  %v99_v8 = vunpack.c.2.s8 %v102_v5  ;;  %v100_v9 = vunpack.c.3.s8 %v102_v5  ;;  %s74_s11 = sshll.u32 %s132_s10, 4  ;;  %s75_s11 = int_to_ptr.vmem [resolvable:$true] %s74_s11 }
   0x4   :  { %25 = vxpose.xlu0.b32.start [1/8] (short) (narrow) %v87_v1, 16  ;;  %vm61_vm0 = vcmask 517120   ;;  %vm63_vm1 = vcmask 516096   ;;  %vm64_vm2 = vsmask.f32 0  ;;  %s108_s0 = scalar_lea.vmem %s75_s11, 64  ;;  %p113_p1 = scmp.lt.s32.totalorder %s75_s11, %s75_s11 }
   0x5   :  { %vm65_vm3 = vmand %vm63_vm1, %vm64_vm2  ;;  %p109_p0 = scmp.ne.s32.totalorder %s75_s11, %s108_s0  ;;  %p114_p2 = scmp.lt.s32.totalorder %s108_s0, %s108_s0 }
   0x7   :  { %p115_p3 = por %p114_p2, %p113_p1 }
   0x8   :  { %26 = vxpose.xlu0.b32.cont [2/8] (short) (narrow) %v88_v2, 16 }
   0x9   :  { %p116_p4 = pnand %p115_p3, %p109_p0 }
   0xc   :  { %27 = vxpose.xlu0.b32.cont [3/8] (short) (narrow) %v91_v3, 16 }
  0x10   :  { %28 = vxpose.xlu0.b32.cont [4/8] (short) (narrow) %v92_v4, 16 }
  0x14   :  { %29 = vxpose.xlu0.b32.cont [5/8] (short) (narrow) %v95_v6, 16 }
  0x18   :  { %30 = vxpose.xlu0.b32.cont [6/8] (short) (narrow) %v96_v7, 16 }
  0x1c   :  { %31 = vxpose.xlu0.b32.cont [7/8] (short) (narrow) %v99_v8, 16 }
  0x20   :  { %32 = vxpose.xlu0.b32.end [8/8] (short) (narrow) %v100_v9, 16 }
  0x84   :  { %v41_v10 = vpop.trf.xlu0 }
  0x85   :  { %v57_v11 = vpack.c.b16 %v41_v10, %v41_v10 }
  0x87   :  { %v58_v12 = vpack.c.b8 %v57_v11, %v57_v11 }
  0x88   :  { %v42_v13 = vpop.trf.xlu0 }
  0x89   :  { %62 = vst.msk [vmem:[#allocation2] sm:$0x3] %vm61_vm0, %v58_v12  ;;  %v59_v14 = vpack.c.b16 %v42_v13, %v42_v13 }
  0x8b   :  { %v60_v16 = vpack.c.b8 %v59_v14, %v59_v14 }
  0x8d   :  { %v67_v17 = vsel %vm65_vm3, %v60_v16, %v66_v15 }
  0x8e   :  { %68 = vst [vmem:[#allocation2 + $0x2] sm:$0x1] %v67_v17 }
  0x8f   :  { %119 = shalt.err (!%p116_p4)
}
  0x90   :  { %s120_s14 = scalar_lea.hbm %s164_s1, 64 }
  0x91   :  { %p121_p5 = scmp.ne.s32.totalorder %s164_s1, %s120_s14  ;;  %p124_p6 = scmp.lt.u32.totalorder %s120_s14, %s164_s1 }
  0x93   :  { %p126_p7 = pnand %p124_p6, %p121_p5 }
  0x95   :  { %129 = shalt.err (!%p126_p7)
}
  0x96   :  { %s133_s19 = smov 32   ;;  %s134_s20 = smov 2  }
  0x97   :  { %80 = dma.vmem_to_hbm [thread:$0]  %s75_s11, 64, %s164_s1, [#allocation3], %s133_s19, %s133_s19, %s134_s20  }
  0x98   :  { %130 = dma.done.wait [#allocation3], 64  }
  0x99   :  { %131 = vsyncadd [#allocation3], 4294967232 }
  0x9a   :  { %84 = vsyncpa [#allocation3], 1 }

</bundles_post_ra>
